<compile_context>
chip_gen: v6e
topology: v6e:2x2x1
jax: 0.10.0
libtpu: 0.0.40
codegen_flags: <defaults>
</compile_context>

<pallas_src>
import math

import jax
import jax.numpy as jnp
import numpy as np
from jax.experimental import pallas as pl
from jax.experimental.pallas import tpu as pltpu

jax.config.update("jax_default_matmul_precision", "highest")

# BatchedCBNLayer buffers at init, eval mode (self.training == False)
RUNNING_MEAN = 0.0
RUNNING_VAR = 1.0
CBN_EPS = 1e-5
INV_STD = float(1.0 / np.sqrt(RUNNING_VAR + CBN_EPS))
LEAKY_SLOPE = 0.2


# ----------------------------------------------------------------------------
# Kernel 1: the LDIF MLP  (Linear -> LeakyReLU -> Linear -> LeakyReLU -> Linear)
# Tiny (microseconds); single-step kernel, sublane-padded batch, lane-aligned
# output.
# ----------------------------------------------------------------------------
def mlp_kernel(x_ref, w1_ref, b1_ref, w2_ref, b2_ref, w3_ref, b3_ref, out_ref):
    x = x_ref[...]
    h = jnp.dot(x, w1_ref[...], preferred_element_type=jnp.float32) + b1_ref[...]
    h = jnp.where(h > 0, h, LEAKY_SLOPE * h)
    h = jnp.dot(h, w2_ref[...], preferred_element_type=jnp.float32) + b2_ref[...]
    h = jnp.where(h > 0, h, LEAKY_SLOPE * h)
    out_ref[...] = (
        jnp.dot(h, w3_ref[...], preferred_element_type=jnp.float32) + b3_ref[...]
    )


def mlp_pallas(x, params):
    B, _ = x.shape
    w1, b1 = params["mlp_w1"], params["mlp_b1"]
    w2, b2 = params["mlp_w2"], params["mlp_b2"]
    w3, b3 = params["mlp_w3"], params["mlp_b3"]
    Dout = w3.shape[1]

    # Sublane-align the (tiny) batch dim: avoids masked partial-sublane stores.
    B_pad = 8 * pl.cdiv(B, 8)
    if B_pad != B:
        x = jnp.pad(x, ((0, B_pad - B), (0, 0)))

    # Lane-align the output (avoids a masked partial-tile store for Dout=E*L).
    Dout_pad = 128 * pl.cdiv(Dout, 128)
    if Dout_pad != Dout:
        w3 = jnp.pad(w3, ((0, 0), (0, Dout_pad - Dout)))
        b3 = jnp.pad(b3, ((0, 0), (0, Dout_pad - Dout)))

    full = lambda a: pl.BlockSpec(a.shape, lambda i: (0,) * a.ndim)
    out = pl.pallas_call(
        mlp_kernel,
        out_shape=jax.ShapeDtypeStruct((B_pad, Dout_pad), jnp.float32),
        grid_spec=pltpu.PrefetchScalarGridSpec(
            num_scalar_prefetch=0,
            grid=(1,),
            in_specs=[full(x), full(w1), full(b1), full(w2), full(b2),
                      full(w3), full(b3)],
            out_specs=pl.BlockSpec((B_pad, Dout_pad), lambda i: (0, 0)),
        ),
        compiler_params=pltpu.CompilerParams(dimension_semantics=("arbitrary",)),
    )(x, w1, b1, w2, b2, w3, b3)
    return out[:B, :Dout]


# ----------------------------------------------------------------------------
# Kernel 2: OccNetDecoder (fc1 -> BatchedOccNetResnetLayer -> CBN -> fc2)
#
# Per grid step:
#   embT : [f_in, TB]       per-block transposed shape embeddings
#   smp  : [3, X]           samples, X = TB*S_pad lanes (lane-dense)
#   R    : [TB, X]          0/1 replication matrix, R[b, x] = (x // S_pad == b)
# All activations are [f, X]: f on sublanes, (row, sample) on lanes.
# ----------------------------------------------------------------------------
def decoder_kernel(emb_ref, smp_ref, r_ref,
                   fc1w_ref, fc1b_ref,
                   cbnw_ref, cbnb_ref,
                   rf1w_ref, rf1b_ref,
                   rf2w_ref, rf2b_ref,
                   fc2w_ref, fc2b_ref,
                   out_ref):
    embT = emb_ref[0]                       # [f_in, TB]
    smp = smp_ref[...]                      # [3, X]
    R = r_ref[...]                          # [TB, X]
    f = cbnw_ref.shape[0] // 6              # implicit_parameter_length

    # (1) All six CBN beta/gamma projections in one matmul (running stats are
    #     already folded into the gamma rows of cbnw/cbnb), then expand each
    #     block row to its S sample lanes with a single 0/1 matmul on the MXU.
    gbT = jnp.dot(cbnw_ref[...], embT,
                  preferred_element_type=jnp.float32) + cbnb_ref[...]   # [6f, TB]
    gbE = jnp.dot(gbT, R, preferred_element_type=jnp.float32)           # [6f, X]
    beta1, gamma1 = gbE[0 * f:1 * f], gbE[1 * f:2 * f]
    beta2, gamma2 = gbE[2 * f:3 * f], gbE[3 * f:4 * f]
    beta3, gamma3 = gbE[4 * f:5 * f], gbE[5 * f:6 * f]

    # (2) OccNetDecoder.fc1 on the MXU: [f,3] @ [3,X].
    se = jnp.dot(fc1w_ref[...], smp,
                 preferred_element_type=jnp.float32) + fc1b_ref[...]    # [f, X]

    # BatchedOccNetResnetLayer (CBNs reduced to a single FMA each).
    se = gamma1 * se + beta1
    init = se
    h = jnp.maximum(se, 0.0)
    h = jnp.dot(rf1w_ref[...], h,
                preferred_element_type=jnp.float32) + rf1b_ref[...]
    h = gamma2 * h + beta2
    h = jnp.maximum(h, 0.0)
    h = jnp.dot(rf2w_ref[...], h,
                preferred_element_type=jnp.float32) + rf2b_ref[...]
    se = init + h

    # OccNetDecoder.bn + fc2 (out_features=1) -> lane-dense [1, X] stripe.
    se = gamma3 * se + beta3
    out_ref[...] = (
        jnp.dot(fc2w_ref[...], se, preferred_element_type=jnp.float32)
        + fc2b_ref[...]
    )


def decoder_pallas(batched_parameters, batched_samples, params, rows_per_block=None):
    BE, f_in = batched_parameters.shape
    S = batched_samples.shape[1]

    # --- tiling --------------------------------------------------------------
    S_pad = 8 * pl.cdiv(S, 8)
    # Granularity g: TB multiple of 8 (embedding sublane blocking) and
    # TB * S_pad multiple of 128 (lane-dense sample / output blocks).
    t_align = 128 // math.gcd(S_pad, 128)
    g = 8 * t_align // math.gcd(8, t_align)           # lcm(8, t_align)

    if rows_per_block is None:
        TB = max(1, 4096 // S_pad)                    # ~4K lanes per grid step
        TB = g * max(1, TB // g)
        if BE >= 2 * g:                               # keep >=2 steps (v7x: 2 TCs)
            TB = min(TB, g * (BE // (2 * g)))
    else:
        TB = g * max(1, rows_per_block // g)
    TB = max(g, min(TB, g * pl.cdiv(BE, g)))          # don't exceed the problem
    BE_pad = TB * pl.cdiv(BE, TB)
    X = TB * S_pad                                    # lanes per grid step
    nb = BE_pad // TB
    assert X % 128 == 0

    # --- inputs in kernel-friendly layouts -----------------------------------
    smp = batched_samples
    if BE_pad != BE or S_pad != S:
        smp = jnp.pad(smp, ((0, BE_pad - BE), (0, S_pad - S), (0, 0)))
    # lane-dense sample slab: [3, BE_pad * S_pad]
    smpT = jnp.transpose(smp, (2, 0, 1)).reshape(3, BE_pad * S_pad)

    emb = batched_parameters
    if BE_pad != BE:
        emb = jnp.pad(emb, ((0, BE_pad - BE), (0, 0)))
    # per-block transposed embeddings: [nb, f_in, TB] (no in-kernel transpose)
    embT3 = jnp.transpose(emb.reshape(nb, TB, f_in), (0, 2, 1))

    # 0/1 replication matrix (grid-invariant; kept resident by constant index map)
    R = (jnp.arange(X, dtype=jnp.int32)[None, :] // S_pad
         == jnp.arange(TB, dtype=jnp.int32)[:, None]).astype(jnp.float32)

    # Fused, transposed CBN projections; fold running stats (mean=0) into gamma.
    cbn_wT = jnp.concatenate(
        [params["bn1_beta_w"].T, params["bn1_gamma_w"].T * INV_STD,
         params["bn2_beta_w"].T, params["bn2_gamma_w"].T * INV_STD,
         params["bn_beta_w"].T,  params["bn_gamma_w"].T * INV_STD], axis=0)
    cbn_bT = jnp.concatenate(
        [params["bn1_beta_b"].T, params["bn1_gamma_b"].T * INV_STD,
         params["bn2_beta_b"].T, params["bn2_gamma_b"].T * INV_STD,
         params["bn_beta_b"].T,  params["bn_gamma_b"].T * INV_STD], axis=0)

    weights = [params["dec_fc1_w"].T, params["dec_fc1_b"].T,   # [f,3], [f,1]
               cbn_wT, cbn_bT,                                 # [6f,f], [6f,1]
               params["rfc1_w"].T, params["rfc1_b"].T,         # [f,f], [f,1]
               params["rfc2_w"].T, params["rfc2_b"].T,         # [f,f], [f,1]
               params["dec_fc2_w"].T, params["dec_fc2_b"]]     # [1,f], [1,1]

    in_specs = [
        pl.BlockSpec((1, f_in, TB), lambda i: (i, 0, 0)),      # embeddings
        pl.BlockSpec((3, X), lambda i: (0, i)),                # samples
        pl.BlockSpec((TB, X), lambda i: (0, 0)),               # replication matrix
    ] + [pl.BlockSpec(w.shape, lambda i: (0, 0)) for w in weights]

    # Explicit per-tile VMEM budget (review): gbE + live [f,X] intermediates +
    # double-buffered sample/output blocks + R.
    bytes_per_lane = 4 * (6 * f_in + 4 * f_in + 2 * 8 + 2 * TB + 2 * 8)
    vmem_est = bytes_per_lane * X + (1 << 20)
    vmem_limit = int(min(max(2 * vmem_est, 32 * 1024 * 1024), 56 * 1024 * 1024))

    out = pl.pallas_call(
        decoder_kernel,
        out_shape=jax.ShapeDtypeStruct((1, BE_pad * S_pad), jnp.float32),
        grid_spec=pltpu.PrefetchScalarGridSpec(
            num_scalar_prefetch=0,
            grid=(nb,),
            in_specs=in_specs,
            out_specs=pl.BlockSpec((1, X), lambda i: (0, i)),
        ),
        compiler_params=pltpu.CompilerParams(
            dimension_semantics=("parallel",),     # independent blocks: 2 TCs on v7x
            vmem_limit_bytes=vmem_limit),
    )(embT3, smpT, R, *weights)
    return out.reshape(BE_pad, S_pad)[:BE, :S]                 # [BE, S]


# ----------------------------------------------------------------------------
# Parameter construction (deterministic, synthetic) + wrapper forward
# ----------------------------------------------------------------------------
def init_ldif_params(key, bottleneck, n_classes, element_count, ipl):
    L = 10 + ipl

    def lin(k, din, dout):
        kw, kb = jax.random.split(k)
        w = jax.random.normal(kw, (din, dout), jnp.float32) / jnp.sqrt(float(din))
        b = 0.01 * jax.random.normal(kb, (1, dout), jnp.float32)
        return w, b

    keys = jax.random.split(key, 13)
    p = {}
    p["mlp_w1"], p["mlp_b1"] = lin(keys[0], bottleneck + n_classes, bottleneck)
    p["mlp_w2"], p["mlp_b2"] = lin(keys[1], bottleneck, bottleneck)
    p["mlp_w3"], p["mlp_b3"] = lin(keys[2], bottleneck, element_count * L)
    p["dec_fc1_w"], p["dec_fc1_b"] = lin(keys[3], 3, ipl)
    p["bn1_beta_w"], p["bn1_beta_b"] = lin(keys[4], ipl, ipl)
    p["bn1_gamma_w"], p["bn1_gamma_b"] = lin(keys[5], ipl, ipl)
    p["rfc1_w"], p["rfc1_b"] = lin(keys[6], ipl, ipl)
    p["bn2_beta_w"], p["bn2_beta_b"] = lin(keys[7], ipl, ipl)
    p["bn2_gamma_w"], p["bn2_gamma_b"] = lin(keys[8], ipl, ipl)
    p["rfc2_w"], p["rfc2_b"] = lin(keys[9], ipl, ipl)
    p["bn_beta_w"], p["bn_beta_b"] = lin(keys[10], ipl, ipl)
    p["bn_gamma_w"], p["bn_gamma_b"] = lin(keys[11], ipl, ipl)
    p["dec_fc2_w"], p["dec_fc2_b"] = lin(keys[12], ipl, 1)
    return p


def ldif_forward(params, embedding, size_cls, samples, element_count, ipl):
    """embedding: [B, bottleneck]   size_cls: [B, n_classes]
       samples:   [B, element_count, S, 3]"""
    L = 10 + ipl
    B = embedding.shape[0]
    S = samples.shape[-2]

    x = jnp.concatenate([embedding, size_cls], axis=1)
    acts = mlp_pallas(x, params)                          # [B, E*L]
    acts = acts.reshape(B, element_count, L)              # structured_implicit_activations

    # eval_implicit_parameters on the implicit slice (StructuredImplicit split)
    implicit = acts[..., 10:]                             # [B, E, ipl]
    batched_parameters = implicit.reshape(B * element_count, ipl)
    batched_samples = samples.reshape(B * element_count, S, 3)
    batched_vals = decoder_pallas(batched_parameters, batched_samples, params)
    vals = batched_vals.reshape(B, element_count, S)[..., None]

    return {"structured_implicit_activations": acts, "local_decisions": vals}


# ---- pure-JAX reference for validation ----
def ldif_reference(params, embedding, size_cls, samples, element_count, ipl):
    L = 10 + ipl
    B = embedding.shape[0]
    S = samples.shape[-2]
    lr = lambda h: jnp.where(h > 0, h, LEAKY_SLOPE * h)

    x = jnp.concatenate([embedding, size_cls], axis=1)
    h = lr(x @ params["mlp_w1"] + params["mlp_b1"])
    h = lr(h @ params["mlp_w2"] + params["mlp_b2"])
    acts = (h @ params["mlp_w3"] + params["mlp_b3"]).reshape(B, element_count, L)

    implicit = acts[..., 10:].reshape(B * element_count, ipl)
    s = samples.reshape(B * element_count, S, 3)

    def cbn(e, se, wb, bb, wg, bg):
        beta = e @ wb + bb
        gamma = e @ wg + bg
        norm = (se - RUNNING_MEAN) * INV_STD
        return gamma[:, None, :] * norm + beta[:, None, :]

    se = s @ params["dec_fc1_w"] + params["dec_fc1_b"]
    se = cbn(implicit, se, params["bn1_beta_w"], params["bn1_beta_b"],
             params["bn1_gamma_w"], params["bn1_gamma_b"])
    init = se
    se = jnp.maximum(se, 0.0)
    se = se @ params["rfc1_w"] + params["rfc1_b"]
    se = cbn(implicit, se, params["bn2_beta_w"], params["bn2_beta_b"],
             params["bn2_gamma_w"], params["bn2_gamma_b"])
    se = jnp.maximum(se, 0.0)
    se = se @ params["rfc2_w"] + params["rfc2_b"]
    se = init + se
    se = cbn(implicit, se, params["bn_beta_w"], params["bn_beta_b"],
             params["bn_gamma_w"], params["bn_gamma_b"])
    vals = (se @ params["dec_fc2_w"] + params["dec_fc2_b"]).reshape(
        B, element_count, S, 1)
    return {"structured_implicit_activations": acts, "local_decisions": vals}


if __name__ == "__main__":
    B = 2
    bottleneck_size = 64               # cfg bottleneck (small for the test)
    n_classes = 9                      # pix3d_n_classes
    element_count = 4
    implicit_parameter_length = 32     # f_dim of OccNetDecoder
    sample_count = 128                 # TPU-friendly (sublane/lane aligned)

    key = jax.random.PRNGKey(0)
    kp, ke, ks, kc = jax.random.split(key, 4)

    params = init_ldif_params(kp, bottleneck_size, n_classes,
                              element_count, implicit_parameter_length)

    # TODO(synk): 'embedding' stands in for the (external) ResNet18 encoder output.
    embedding = jax.random.normal(ke, (B, bottleneck_size), jnp.float32)
    size_cls = jax.nn.one_hot(jnp.array([1, 5]), n_classes, dtype=jnp.float32)
    samples = 0.75 * (
        2.0 * jax.random.uniform(ks, (B, element_count, sample_count, 3),
                                 jnp.float32) - 1.0)

    out = ldif_forward(params, embedding, size_cls, samples,
                       element_count, implicit_parameter_length)
    jax.block_until_ready(out)

    ref = ldif_reference(params, embedding, size_cls, samples,
                         element_count, implicit_parameter_length)
    np.testing.assert_allclose(
        np.asarray(out["structured_implicit_activations"]),
        np.asarray(ref["structured_implicit_activations"]), rtol=1e-4, atol=1e-4)
    np.testing.assert_allclose(
        np.asarray(out["local_decisions"]),
        np.asarray(ref["local_decisions"]), rtol=1e-4, atol=1e-4)

    print("KERNEL_OK")
</pallas_src>

<mosaic_0001>
module attributes {stable_mosaic.version = 11 : i64} {
  func.func @mlp_kernel(%arg0: i32, %arg1: memref<8x73xf32, #tpu.memory_space<vmem>>, %arg2: memref<73x64xf32, #tpu.memory_space<vmem>>, %arg3: memref<1x64xf32, #tpu.memory_space<vmem>>, %arg4: memref<64x64xf32, #tpu.memory_space<vmem>>, %arg5: memref<1x64xf32, #tpu.memory_space<vmem>>, %arg6: memref<64x256xf32, #tpu.memory_space<vmem>>, %arg7: memref<1x256xf32, #tpu.memory_space<vmem>>, %arg8: memref<8x256xf32, #tpu.memory_space<vmem>>) attributes {dimension_semantics = [#tpu.dimension_semantics<arbitrary>], iteration_bounds = array<i64: 1>, scalar_prefetch = 0 : i64, scratch_operands = 0 : i64, tpu.core_type = #tpu.core_type<tc>, window_params = [{pipeline_mode = #tpu.pipeline_mode<synchronous>, transform_indices = @transform_0, window_bounds = array<i64: 8, 73>}, {pipeline_mode = #tpu.pipeline_mode<synchronous>, transform_indices = @transform_1, window_bounds = array<i64: 73, 64>}, {pipeline_mode = #tpu.pipeline_mode<synchronous>, transform_indices = @transform_2, window_bounds = array<i64: 1, 64>}, {pipeline_mode = #tpu.pipeline_mode<synchronous>, transform_indices = @transform_3, window_bounds = array<i64: 64, 64>}, {pipeline_mode = #tpu.pipeline_mode<synchronous>, transform_indices = @transform_4, window_bounds = array<i64: 1, 64>}, {pipeline_mode = #tpu.pipeline_mode<synchronous>, transform_indices = @transform_5, window_bounds = array<i64: 64, 256>}, {pipeline_mode = #tpu.pipeline_mode<synchronous>, transform_indices = @transform_6, window_bounds = array<i64: 1, 256>}, {pipeline_mode = #tpu.pipeline_mode<synchronous>, transform_indices = @transform_7, window_bounds = array<i64: 8, 256>}]} {
    %c0 = arith.constant 0 : index
    %c0_0 = arith.constant 0 : index
    %0 = vector.load %arg1[%c0, %c0_0] : memref<8x73xf32, #tpu.memory_space<vmem>>, vector<8x73xf32>
    %c0_1 = arith.constant 0 : index
    %c0_2 = arith.constant 0 : index
    %1 = vector.load %arg2[%c0_1, %c0_2] : memref<73x64xf32, #tpu.memory_space<vmem>>, vector<73x64xf32>
    %cst = arith.constant dense<0.000000e+00> : vector<8x64xf32>
    %2 = tpu.matmul %0, %1, %cst {dimension_numbers = #tpu.dot_dimension_numbers<[1], [0], [0], [1], [0, 0, 1, 1], [], []>, precision = #tpu.contract_precision<fp32>} : vector<8x73xf32>, vector<73x64xf32>, vector<8x64xf32> -> vector<8x64xf32>
    %c0_3 = arith.constant 0 : index
    %c0_4 = arith.constant 0 : index
    %3 = vector.load %arg3[%c0_3, %c0_4] : memref<1x64xf32, #tpu.memory_space<vmem>>, vector<1x64xf32>
    %4 = vector.broadcast %3 : vector<1x64xf32> to vector<8x64xf32>
    %5 = arith.addf %2, %4 : vector<8x64xf32>
    %cst_5 = arith.constant 0.000000e+00 : f32
    %6 = vector.broadcast %cst_5 : f32 to vector<8x64xf32>
    %7 = arith.cmpf ogt, %5, %6 : vector<8x64xf32>
    %cst_6 = arith.constant 2.000000e-01 : f32
    %8 = vector.broadcast %cst_6 : f32 to vector<8x64xf32>
    %9 = arith.mulf %8, %5 : vector<8x64xf32>
    %10 = arith.select %7, %5, %9 : vector<8x64xi1>, vector<8x64xf32>
    %c0_7 = arith.constant 0 : index
    %c0_8 = arith.constant 0 : index
    %11 = vector.load %arg4[%c0_7, %c0_8] : memref<64x64xf32, #tpu.memory_space<vmem>>, vector<64x64xf32>
    %cst_9 = arith.constant dense<0.000000e+00> : vector<8x64xf32>
    %12 = tpu.matmul %10, %11, %cst_9 {dimension_numbers = #tpu.dot_dimension_numbers<[1], [0], [0], [1], [0, 0, 1, 1], [], []>, precision = #tpu.contract_precision<fp32>} : vector<8x64xf32>, vector<64x64xf32>, vector<8x64xf32> -> vector<8x64xf32>
    %c0_10 = arith.constant 0 : index
    %c0_11 = arith.constant 0 : index
    %13 = vector.load %arg5[%c0_10, %c0_11] : memref<1x64xf32, #tpu.memory_space<vmem>>, vector<1x64xf32>
    %14 = vector.broadcast %13 : vector<1x64xf32> to vector<8x64xf32>
    %15 = arith.addf %12, %14 : vector<8x64xf32>
    %cst_12 = arith.constant 0.000000e+00 : f32
    %16 = vector.broadcast %cst_12 : f32 to vector<8x64xf32>
    %17 = arith.cmpf ogt, %15, %16 : vector<8x64xf32>
    %cst_13 = arith.constant 2.000000e-01 : f32
    %18 = vector.broadcast %cst_13 : f32 to vector<8x64xf32>
    %19 = arith.mulf %18, %15 : vector<8x64xf32>
    %20 = arith.select %17, %15, %19 : vector<8x64xi1>, vector<8x64xf32>
    %c0_14 = arith.constant 0 : index
    %c0_15 = arith.constant 0 : index
    %21 = vector.load %arg6[%c0_14, %c0_15] : memref<64x256xf32, #tpu.memory_space<vmem>>, vector<64x256xf32>
    %cst_16 = arith.constant dense<0.000000e+00> : vector<8x256xf32>
    %22 = tpu.matmul %20, %21, %cst_16 {dimension_numbers = #tpu.dot_dimension_numbers<[1], [0], [0], [1], [0, 0, 1, 1], [], []>, precision = #tpu.contract_precision<fp32>} : vector<8x64xf32>, vector<64x256xf32>, vector<8x256xf32> -> vector<8x256xf32>
    %c0_17 = arith.constant 0 : index
    %c0_18 = arith.constant 0 : index
    %23 = vector.load %arg7[%c0_17, %c0_18] : memref<1x256xf32, #tpu.memory_space<vmem>>, vector<1x256xf32>
    %24 = vector.broadcast %23 : vector<1x256xf32> to vector<8x256xf32>
    %25 = arith.addf %22, %24 : vector<8x256xf32>
    %c0_19 = arith.constant 0 : index
    %c0_20 = arith.constant 0 : index
    %26 = vector.load %arg8[%c0_19, %c0_20] : memref<8x256xf32, #tpu.memory_space<vmem>>, vector<8x256xf32>
    tpu.vector_store %arg8[%c0_19, %c0_20], %25 {strides = array<i32>} : memref<8x256xf32, #tpu.memory_space<vmem>>, vector<8x256xf32>,
    return
  }
  func.func @transform_0(%arg0: i32) -> (i32, i32) {
    %c0_i32 = arith.constant 0 : i32
    %c0_i32_0 = arith.constant 0 : i32
    %c0_i32_1 = arith.constant 0 : i32
    return %c0_i32, %c0_i32_0 : i32, i32
  }
  func.func @transform_1(%arg0: i32) -> (i32, i32) {
    %c0_i32 = arith.constant 0 : i32
    %c0_i32_0 = arith.constant 0 : i32
    %c0_i32_1 = arith.constant 0 : i32
    return %c0_i32, %c0_i32_0 : i32, i32
  }
  func.func @transform_2(%arg0: i32) -> (i32, i32) {
    %c0_i32 = arith.constant 0 : i32
    %c0_i32_0 = arith.constant 0 : i32
    %c0_i32_1 = arith.constant 0 : i32
    return %c0_i32, %c0_i32_0 : i32, i32
  }
  func.func @transform_3(%arg0: i32) -> (i32, i32) {
    %c0_i32 = arith.constant 0 : i32
    %c0_i32_0 = arith.constant 0 : i32
    %c0_i32_1 = arith.constant 0 : i32
    return %c0_i32, %c0_i32_0 : i32, i32
  }
  func.func @transform_4(%arg0: i32) -> (i32, i32) {
    %c0_i32 = arith.constant 0 : i32
    %c0_i32_0 = arith.constant 0 : i32
    %c0_i32_1 = arith.constant 0 : i32
    return %c0_i32, %c0_i32_0 : i32, i32
  }
  func.func @transform_5(%arg0: i32) -> (i32, i32) {
    %c0_i32 = arith.constant 0 : i32
    %c0_i32_0 = arith.constant 0 : i32
    %c0_i32_1 = arith.constant 0 : i32
    return %c0_i32, %c0_i32_0 : i32, i32
  }
  func.func @transform_6(%arg0: i32) -> (i32, i32) {
    %c0_i32 = arith.constant 0 : i32
    %c0_i32_0 = arith.constant 0 : i32
    %c0_i32_1 = arith.constant 0 : i32
    return %c0_i32, %c0_i32_0 : i32, i32
  }
  func.func @transform_7(%arg0: i32) -> (i32, i32) {
    %c0_i32 = arith.constant 0 : i32
    %c0_i32_0 = arith.constant 0 : i32
    %c0_i32_1 = arith.constant 0 : i32
    return %c0_i32, %c0_i32_0 : i32, i32
  }
}

</mosaic_0001>

<bundles_post_ra>
// kernel: tpu_custom_call.1
= control target key start
LH: loop header
LB: loop body
LE: loop exit
PB: predicated region body
PF: predicated region fallthrough
CT: control target
= control target key end

     0   :  { %12 = vsyncpa [#allocation3], 0  ;;  %s3131_s0 = inlined_call_operand.vmem [shape: f32[8,73], index: 0, kind: input, shape index: {}]   ;;  %s3132_s1 = inlined_call_operand.vmem [shape: f32[73,64], index: 1, kind: input, shape index: {}]   ;;  %s3133_s2 = inlined_call_operand.vmem [shape: f32[1,64], index: 2, kind: input, shape index: {}]   ;;  %s3134_s3 = inlined_call_operand.hbm [shape: f32[64,64], index: 3, kind: input, shape index: {}]   ;;  %s3135_s4 = inlined_call_operand.vmem [shape: f32[1,64], index: 4, kind: input, shape index: {}]   ;;  %s3136_s5 = inlined_call_operand.vmem [shape: f32[64,256], index: 5, kind: input, shape index: {}]   ;;  %s3137_s6 = inlined_call_operand.vmem [shape: f32[1,256], index: 6, kind: input, shape index: {}]   ;;  %s3138_s7 = inlined_call_operand.hbm [shape: f32[8,256], index: 7, kind: output, shape index: {}]  }
   0x1   :  { %13 = vsyncpa [#allocation4], 0  ;;  %s2311_s24 = smov [#allocation2]  }
   0x2   :  { %s25_s25 = sshll.u32 %s2311_s24, 4  ;;  %s26_s25 = int_to_ptr.vmem [resolvable:$true] %s25_s25 }
   0x3   :  { %s2275_s26 = scalar_lea.vmem %s26_s25, 1024  ;;  %p2280_p1 = scmp.lt.s32.totalorder %s26_s25, %s26_s25 }
   0x4   :  { %p2276_p0 = scmp.ne.s32.totalorder %s26_s25, %s2275_s26  ;;  %p2281_p2 = scmp.lt.s32.totalorder %s2275_s26, %s2275_s26 }
   0x6   :  { %p2282_p3 = por %p2281_p2, %p2280_p1 }
   0x8   :  { %p2283_p4 = pnand %p2282_p3, %p2276_p0 }
   0xa   :  { %2286 = shalt.err (!%p2283_p4)
}
   0xb   :  { %s2312_s27 = smov 128   ;;  %s2313_s28 = smov 8  }
   0xc   :  { %31 = dma.hbm_to_vmem [thread:$0]  %s3134_s3, 1024, %s26_s25, [#allocation3], %s2312_s27, %s2312_s27, %s2313_s28  }
   0xd   :  { %2307 = dma.done.wait [#allocation3], 1024  }
   0xe   :  { %2308 = vsyncadd [#allocation3], 4294966272  ;;  %v2314_v0 = vmov 0.0   ;;  %vm2315_vm0 = vmmov 0   ;;  %vm63_vm1 = vcmask 1040384   ;;  %v50_v2 = vld [vmem:[%s3132_s1 + $0x40] sm:$0xff] }
   0xf   :  { %2009 = vmatprep.subr.mxu0 %v2314_v0  ;;  %2032 = vmatprep.subr.mxu1 %v2314_v0  ;;  %v51_v1 = vld [vmem:[%s3132_s1 + $0x48] sm:$0x1]  ;;  %v49_v3 = vld [vmem:[%s3132_s1 + $0x38] sm:$0xff]  ;;  %v2375_v5 = vand.u32 4294901760, %v50_v2  ;;  %v48_v7 = vld [vmem:[%s3132_s1 + $0x30] sm:$0xff]  ;;  %vm59_vm2 = vcmask 596992  }
  0x10   :  { %2029 = vmatprep.mubr.msk.f32.mxu0 %vm2315_vm0, %v2314_v0  ;;  %2052 = vmatprep.mubr.msk.f32.mxu1 %vm2315_vm0, %v2314_v0  ;;  %v65_v4 = vsel %vm63_vm1, %v51_v1, 0  ;;  %v2377_v6 = vand.u32 4294901760, %v49_v3  ;;  %v47_v8 = vld [vmem:[%s3132_s1 + $0x28] sm:$0xff]  ;;  %v46_v9 = vld [vmem:[%s3132_s1 + $0x20] sm:$0xff]  ;;  %v2390_v11 = vand.u32 4294901760, %v48_v7  ;;  %v45_v14 = vld [vmem:[%s3132_s1 + $0x18] sm:$0xff] }
  0x11   :  { %v2388_v10 = vand.u32 4294901760, %v65_v4  ;;  %v2392_v12 = vand.u32 4294901760, %v47_v8  ;;  %v2394_v13 = vand.u32 4294901760, %v46_v9  ;;  %v2400_v15 = vsub.f32 %v50_v2, %v2375_v5  ;;  %v41_v17 = vld [vmem:[%s3131_s0] sm:$0xff]  ;;  %v44_v20 = vld [vmem:[%s3132_s1 + $0x10] sm:$0xff]  ;;  %v43_v25 = vld [vmem:[%s3132_s1 + $0x8] sm:$0xff] }
  0x12   :  { %v2403_v16 = vsub.f32 %v49_v3, %v2377_v6  ;;  %v2412_v19 = vand.u32 4294901760, %v45_v14  ;;  %v2418_v21 = vsub.f32 %v48_v7, %v2390_v11  ;;  %v42_v28 = vld [vmem:[%s3132_s1] sm:$0xff]  ;;  %v61_v30 = vsel %vm59_vm2, %v41_v17, 0 }
  0x13   :  { %2010 = vmatpush3.msra.mxu0 %v2388_v10  ;;  %v2410_v18 = vsub.f32 %v65_v4, %v2388_v10  ;;  %v2421_v22 = vsub.f32 %v47_v8, %v2392_v12  ;;  %v174_v23 = vand.u32 4294901760, %v2400_v15  ;;  %v2436_v29 = vsub.f32 %v46_v9, %v2394_v13  ;;  %v639_v8 = vld [vmem:[#allocation2 + $0x30] sm:$0xff] }
  0x14   :  { %2011 = vmatprep.subr.mxu0 %v2314_v0  ;;  %v181_v24 = vand.u32 4294901760, %v2403_v16  ;;  %v188_v27 = vand.u32 4294901760, %v2418_v21  ;;  %v2443_v32 = vand.u32 4294901760, %v44_v20  ;;  %v2446_v34 = vand.u32 4294901760, %v61_v30 }
  0x15   :  { %2012 = vmatpush3.msra.mxu0 %v2375_v5  ;;  %v167_v26 = vand.u32 4294901760, %v2410_v18  ;;  %v175_v31 = vsub.f32 %v2400_v15, %v174_v23  ;;  %v195_v33 = vand.u32 4294901760, %v2421_v22  ;;  %v2455_v37 = vand.u32 4294901760, %v43_v25 }
  0x16   :  { %2013 = vmatprep.subr.mxu0 %v2314_v0  ;;  %v182_v36 = vsub.f32 %v2403_v16, %v181_v24  ;;  %v2458_v38 = vsub.f32 %v45_v14, %v2412_v19  ;;  %v2461_v39 = vand.u32 4294901760, %v42_v28  ;;  %v2464_v40 = vsub.f32 %v61_v30, %v2446_v34 }
  0x17   :  { %2014 = vmatpush3.msra.mxu0 %v2377_v6  ;;  %v168_v35 = vsub.f32 %v2410_v18, %v167_v26  ;;  %v176_v42 = vand.u32 4294901760, %v175_v31  ;;  %v189_v43 = vsub.f32 %v2418_v21, %v188_v27  ;;  %v202_v44 = vand.u32 4294901760, %v2436_v29 }
  0x18   :  { %2015 = vmatprep.subr.mxu0 %v2314_v0  ;;  %v196_v45 = vsub.f32 %v2421_v22, %v195_v33  ;;  %v2476_v46 = vsub.f32 %v44_v20, %v2443_v32  ;;  %v183_v47 = vand.u32 4294901760, %v182_v36  ;;  %v144_v48 = vand.u32 4294901760, %v2464_v40  ;;  %v636_v20 = vld [vmem:[#allocation2 + $0x18] sm:$0xff] }
  0x19   :  { %2016 = vmatpush3.msra.mxu0 %v2390_v11  ;;  %v169_v41 = vand.u32 4294901760, %v168_v35  ;;  %v209_v49 = vand.u32 4294901760, %v2458_v38  ;;  %v2482_v50 = vsub.f32 %v43_v25, %v2455_v37  ;;  %v190_v51 = vand.u32 4294901760, %v189_v43 }
  0x1a   :  { %2017 = vmatprep.subr.mxu0 %v2314_v0  ;;  %v203_v52 = vsub.f32 %v2436_v29, %v202_v44  ;;  %v216_v53 = vand.u32 4294901760, %v2476_v46  ;;  %v2492_v54 = vsub.f32 %v42_v28, %v2461_v39  ;;  %v197_v55 = vand.u32 4294901760, %v196_v45 }
  0x1b   :  { %2018 = vmatpush3.msra.mxu0 %v2392_v12  ;;  %2033 = vmatpush3.msra.mxu1 %v169_v41  ;;  %v145_v56 = vsub.f32 %v2464_v40, %v144_v48  ;;  %v210_v57 = vsub.f32 %v2458_v38, %v209_v49  ;;  %v223_v58 = vand.u32 4294901760, %v2482_v50  ;;  %v2673_v25 = vand.u32 4294901760, %v636_v20 }
  0x1c   :  { %2019 = vmatprep.subr.mxu0 %v2314_v0  ;;  %2034 = vmatprep.subr.mxu1 %v2314_v0  ;;  %v204_v59 = vand.u32 4294901760, %v203_v52  ;;  %v217_v60 = vsub.f32 %v2476_v46, %v216_v53  ;;  %v230_v61 = vand.u32 4294901760, %v2492_v54  ;;  %vm648_vm4 = vcmask 523264  }
  0x1d   :  { %2020 = vmatpush3.msra.mxu0 %v2394_v13  ;;  %2035 = vmatpush3.msra.mxu1 %v176_v42  ;;  %v146_v62 = vand.u32 4294901760, %v145_v56  ;;  %v211_v63 = vand.u32 4294901760, %v210_v57  ;;  %v224_v1 = vsub.f32 %v2482_v50, %v223_v58  ;;  %v2684_v31 = vsub.f32 %v636_v20, %v2673_v25 }
  0x1e   :  { %2021 = vmatprep.subr.mxu0 %v2314_v0  ;;  %2036 = vmatprep.subr.mxu1 %v2314_v0  ;;  %v218_v2 = vand.u32 4294901760, %v217_v60  ;;  %v231_v3 = vsub.f32 %v2492_v54, %v230_v61 }
  0x1f   :  { %2022 = vmatpush3.msra.mxu0 %v2412_v19  ;;  %2037 = vmatpush3.msra.mxu1 %v183_v47  ;;  %v225_v4 = vand.u32 4294901760, %v224_v1 }
  0x20   :  { %2023 = vmatprep.subr.mxu0 %v2314_v0  ;;  %2038 = vmatprep.subr.mxu1 %v2314_v0  ;;  %v232_v7 = vand.u32 4294901760, %v231_v3 }
  0x21   :  { %2024 = vmatpush3.msra.mxu0 %v2443_v32  ;;  %2039 = vmatpush3.msra.mxu1 %v190_v51 }
  0x22   :  { %2025 = vmatprep.subr.mxu0 %v2314_v0  ;;  %2040 = vmatprep.subr.mxu1 %v2314_v0 }
  0x23   :  { %2026 = vmatpush3.msra.mxu0 %v2455_v37  ;;  %2041 = vmatpush3.msra.mxu1 %v197_v55 }
  0x24   :  { %2027 = vmatprep.subr.mxu0 %v2314_v0  ;;  %2042 = vmatprep.subr.mxu1 %v2314_v0 }
  0x25   :  { %2028 = vmatpush3.msra.mxu0 %v2461_v39  ;;  %2043 = vmatpush3.msra.mxu1 %v204_v59 }
  0x26   :  { %2044 = vmatprep.subr.mxu1 %v2314_v0  ;;  %2055 = vmatprep.subr.mxu0 %v2314_v0 }
  0x27   :  { %2030 = vmatmul.mubr.f32.vlgmr.msra.gmra.mxu0 %v146_v62  ;;  %2045 = vmatpush3.msra.mxu1 %v211_v63  ;;  %v1887_v62 = vld [vmem:[%s3133_s2] ss:$0 sm:$0xff] }
  0x28   :  { %2056 = vmatpush3.msra.mxu0 %v2410_v18  ;;  %2046 = vmatprep.subr.mxu1 %v2314_v0 }
  0x29   :  { %2057 = vmatprep.subr.mxu0 %v2314_v0  ;;  %2047 = vmatpush3.msra.mxu1 %v218_v2 }
  0x2a   :  { %2058 = vmatpush3.msra.mxu0 %v2400_v15  ;;  %2048 = vmatprep.subr.mxu1 %v2314_v0  ;;  %v637_v15 = vld [vmem:[#allocation2 + $0x20] sm:$0xff] }
  0x2b   :  { %2059 = vmatprep.subr.mxu0 %v2314_v0  ;;  %2049 = vmatpush3.msra.mxu1 %v225_v4 }
  0x2c   :  { %2060 = vmatpush3.msra.mxu0 %v2403_v16  ;;  %2050 = vmatprep.subr.mxu1 %v2314_v0 }
  0x2d   :  { %2061 = vmatprep.subr.mxu0 %v2314_v0  ;;  %2051 = vmatpush3.msra.mxu1 %v232_v7 }
  0x2e   :  { %2062 = vmatpush3.msra.mxu0 %v2418_v21  ;;  %2053 = vmatmul.mubr.f32.vlgmr.msra.gmra.mxu1 %v2446_v34 }
  0x2f   :  { %2063 = vmatprep.subr.mxu0 %v2314_v0  ;;  %2078 = vmatprep.subr.mxu1 %v2314_v0 }
  0x30   :  { %2064 = vmatpush3.msra.mxu0 %v2421_v22  ;;  %2079 = vmatpush3.msra.mxu1 %v2388_v10 }
  0x31   :  { %2065 = vmatprep.subr.mxu0 %v2314_v0  ;;  %2080 = vmatprep.subr.mxu1 %v2314_v0 }
  0x32   :  { %2066 = vmatpush3.msra.mxu0 %v2436_v29  ;;  %2081 = vmatpush3.msra.mxu1 %v2375_v5 }
  0x33   :  { %2067 = vmatprep.subr.mxu0 %v2314_v0  ;;  %2082 = vmatprep.subr.mxu1 %v2314_v0 }
  0x34   :  { %2068 = vmatpush3.msra.mxu0 %v2458_v38  ;;  %2083 = vmatpush3.msra.mxu1 %v2377_v6  ;;  %v633_v38 = vld [vmem:[#allocation2] sm:$0xff] }
  0x35   :  { %2069 = vmatprep.subr.mxu0 %v2314_v0  ;;  %2084 = vmatprep.subr.mxu1 %v2314_v0  ;;  %v2703_v42 = vand.u32 4294901760, %v633_v38 }
  0x36   :  { %2070 = vmatpush3.msra.mxu0 %v2476_v46  ;;  %2085 = vmatpush3.msra.mxu1 %v2390_v11 }
  0x37   :  { %2071 = vmatprep.subr.mxu0 %v2314_v0  ;;  %2086 = vmatprep.subr.mxu1 %v2314_v0  ;;  %v2716_v46 = vsub.f32 %v633_v38, %v2703_v42 }
  0x38   :  { %2072 = vmatpush3.msra.mxu0 %v2482_v50  ;;  %2087 = vmatpush3.msra.mxu1 %v2392_v12 }
  0x39   :  { %2073 = vmatprep.subr.mxu0 %v2314_v0  ;;  %2088 = vmatprep.subr.mxu1 %v2314_v0  ;;  %v803_v50 = vand.u32 4294901760, %v2716_v46 }
  0x3a   :  { %2074 = vmatpush3.msra.mxu0 %v2492_v54  ;;  %2075 = vmatprep.mubr.msk.f32.mxu0 %vm2315_vm0, %v2314_v0 }
  0x3b   :  { %2089 = vmatpush3.msra.mxu1 %v2394_v13  ;;  %2076 = vmatmul.mubr.f32.vlgmr.msra.gmra.mxu0 %v2464_v40  ;;  %v804_v52 = vsub.f32 %v2716_v46, %v803_v50 }
  0x3c   :  { %2090 = vmatprep.subr.mxu1 %v2314_v0  ;;  %2101 = vmatprep.subr.mxu0 %v2314_v0 }
  0x3d   :  { %2091 = vmatpush3.msra.mxu1 %v2412_v19  ;;  %2102 = vmatpush3.msra.mxu0 %v167_v26  ;;  %v635_v26 = vld [vmem:[#allocation2 + $0x10] sm:$0xff] }
  0x3e   :  { %2092 = vmatprep.subr.mxu1 %v2314_v0  ;;  %2103 = vmatprep.subr.mxu0 %v2314_v0  ;;  %v2680_v30 = vand.u32 4294901760, %v635_v26 }
  0x3f   :  { %2093 = vmatpush3.msra.mxu1 %v2443_v32  ;;  %2104 = vmatpush3.msra.mxu0 %v174_v23 }
  0x40   :  { %2094 = vmatprep.subr.mxu1 %v2314_v0  ;;  %2105 = vmatprep.subr.mxu0 %v2314_v0  ;;  %v2691_v35 = vsub.f32 %v635_v26, %v2680_v30 }
  0x41   :  { %2095 = vmatpush3.msra.mxu1 %v2455_v37  ;;  %2106 = vmatpush3.msra.mxu0 %v181_v24 }
  0x42   :  { %2096 = vmatprep.subr.mxu1 %v2314_v0  ;;  %2107 = vmatprep.subr.mxu0 %v2314_v0  ;;  %v789_v40 = vand.u32 4294901760, %v2691_v35 }
  0x43   :  { %2097 = vmatpush3.msra.mxu1 %v2461_v39  ;;  %2098 = vmatprep.mubr.msk.f32.mxu1 %vm2315_vm0, %v2314_v0 }
  0x44   :  { %2108 = vmatpush3.msra.mxu0 %v188_v27  ;;  %2099 = vmatmul.mubr.f32.vlgmr.msra.gmra.mxu1 %v144_v48 }
  0x45   :  { %2109 = vmatprep.subr.mxu0 %v2314_v0  ;;  %2124 = vmatprep.subr.mxu1 %v2314_v0 }
  0x46   :  { %2110 = vmatpush3.msra.mxu0 %v195_v33  ;;  %2125 = vmatpush3.msra.mxu1 %v2388_v10  ;;  %v2642_v10 = vand.u32 4294901760, %v639_v8 }
  0x47   :  { %2111 = vmatprep.subr.mxu0 %v2314_v0  ;;  %2126 = vmatprep.subr.mxu1 %v2314_v0 }
  0x48   :  { %2112 = vmatpush3.msra.mxu0 %v202_v44  ;;  %2127 = vmatpush3.msra.mxu1 %v2375_v5  ;;  %v640_v5 = vld [vmem:[#allocation2 + $0x38] sm:$0xff]  ;;  %v790_v44 = vsub.f32 %v2691_v35, %v789_v40 }
  0x49   :  { %2113 = vmatprep.subr.mxu0 %v2314_v0  ;;  %2128 = vmatprep.subr.mxu1 %v2314_v0 }
  0x4a   :  { %2114 = vmatpush3.msra.mxu0 %v209_v49  ;;  %2129 = vmatpush3.msra.mxu1 %v2377_v6  ;;  %v2637_v6 = vand.u32 4294901760, %v640_v5  ;;  %v791_v48 = vand.u32 4294901760, %v790_v44 }
  0x4b   :  { %2115 = vmatprep.subr.mxu0 %v2314_v0  ;;  %2130 = vmatprep.subr.mxu1 %v2314_v0 }
  0x4c   :  { %2116 = vmatpush3.msra.mxu0 %v216_v53  ;;  %2131 = vmatpush3.msra.mxu1 %v2390_v11  ;;  %v2640_v9 = vsub.f32 %v640_v5, %v2637_v6  ;;  %v638_v11 = vld [vmem:[#allocation2 + $0x28] sm:$0xff]  ;;  %v805_v53 = vand.u32 4294901760, %v804_v52 }
  0x4d   :  { %2117 = vmatprep.subr.mxu0 %v2314_v0  ;;  %2132 = vmatprep.subr.mxu1 %v2314_v0  ;;  %v2650_v14 = vand.u32 4294901760, %v638_v11 }
  0x4e   :  { %2118 = vmatpush3.msra.mxu0 %v223_v58  ;;  %2133 = vmatpush3.msra.mxu1 %v2392_v12  ;;  %v754_v12 = vand.u32 4294901760, %v2640_v9 }
  0x4f   :  { %2119 = vmatprep.subr.mxu0 %v2314_v0  ;;  %2134 = vmatprep.subr.mxu1 %v2314_v0  ;;  %v2659_v18 = vsub.f32 %v638_v11, %v2650_v14 }
  0x50   :  { %2120 = vmatpush3.msra.mxu0 %v230_v61  ;;  %2121 = vmatprep.mubr.msk.f32.mxu0 %vm2315_vm0, %v2314_v0  ;;  %v755_v16 = vsub.f32 %v2640_v9, %v754_v12 }
  0x51   :  { %2135 = vmatpush3.msra.mxu1 %v2394_v13  ;;  %2122 = vmatmul.mubr.f32.vlgmr.msra.gmra.mxu0 %v2446_v34  ;;  %v2648_v13 = vsub.f32 %v639_v8, %v2642_v10  ;;  %v768_v23 = vand.u32 4294901760, %v2659_v18 }
  0x52   :  { %2136 = vmatprep.subr.mxu1 %v2314_v0  ;;  %2144 = vmatprep.mubr.msk.f32.mxu1 %vm2315_vm0, %v2314_v0  ;;  %v756_v21 = vand.u32 4294901760, %v755_v16 }
  0x53   :  { %2137 = vmatpush3.msra.mxu1 %v2412_v19  ;;  %2147 = vmatprep.subr.mxu0 %v2314_v0  ;;  %v761_v17 = vand.u32 4294901760, %v2648_v13  ;;  %v2661_v19 = vand.u32 4294901760, %v637_v15  ;;  %v769_v28 = vsub.f32 %v2659_v18, %v768_v23 }
  0x54   :  { %2138 = vmatprep.subr.mxu1 %v2314_v0  ;;  %2163 = vmatprep.mubr.msk.f32.mxu0 %vm2315_vm0, %v2314_v0 }
  0x55   :  { %2139 = vmatpush3.msra.mxu1 %v2443_v32  ;;  %2148 = vmatpush3.msra.mxu0 %v2637_v6  ;;  %v762_v22 = vsub.f32 %v2648_v13, %v761_v17  ;;  %v2670_v24 = vsub.f32 %v637_v15, %v2661_v19  ;;  %v634_v32 = vld [vmem:[#allocation2 + $0x8] sm:$0xff]  ;;  %v770_v33 = vand.u32 4294901760, %v769_v28 }
  0x56   :  { %2140 = vmatprep.subr.mxu1 %v2314_v0  ;;  %2149 = vmatprep.subr.mxu0 %v2314_v0  ;;  %v2693_v36 = vand.u32 4294901760, %v634_v32 }
  0x57   :  { %2141 = vmatpush3.msra.mxu1 %v2455_v37  ;;  %2150 = vmatpush3.msra.mxu0 %v2642_v10  ;;  %v763_v27 = vand.u32 4294901760, %v762_v22  ;;  %v775_v29 = vand.u32 4294901760, %v2670_v24  ;;  %v782_v37 = vand.u32 4294901760, %v2684_v31 }
  0x58   :  { %2142 = vmatprep.subr.mxu1 %v2314_v0  ;;  %2151 = vmatprep.subr.mxu0 %v2314_v0  ;;  %v2701_v41 = vsub.f32 %v634_v32, %v2693_v36 }
  0x59   :  { %2143 = vmatpush3.msra.mxu1 %v2461_v39  ;;  %2152 = vmatpush3.msra.mxu0 %v2650_v14  ;;  %v783_v43 = vsub.f32 %v2684_v31, %v782_v37 }
  0x5a   :  { %2145 = vmatmul.mubr.f32.vlgmr.msra.gmra.mxu1 %v2446_v34  ;;  %2166 = vmatprep.subr.mxu1 %v2314_v0  ;;  %v776_v34 = vsub.f32 %v2670_v24, %v775_v29  ;;  %v796_v45 = vand.u32 4294901760, %v2701_v41 }
  0x5b   :  { %2182 = vmatprep.mubr.msk.f32.mxu1 %vm2315_vm0, %v2314_v0  ;;  %2153 = vmatprep.subr.mxu0 %v2314_v0  ;;  %v784_v47 = vand.u32 4294901760, %v783_v43 }
  0x5c   :  { %2154 = vmatpush3.msra.mxu0 %v2661_v19  ;;  %2167 = vmatpush3.msra.mxu1 %v756_v21  ;;  %v777_v39 = vand.u32 4294901760, %v776_v34  ;;  %v797_v49 = vsub.f32 %v2701_v41, %v796_v45 }
  0x5d   :  { %2155 = vmatprep.subr.mxu0 %v2314_v0  ;;  %2168 = vmatprep.subr.mxu1 %v2314_v0 }
  0x5e   :  { %2156 = vmatpush3.msra.mxu0 %v2673_v25  ;;  %2169 = vmatpush3.msra.mxu1 %v763_v27  ;;  %v798_v51 = vand.u32 4294901760, %v797_v49 }
  0x5f   :  { %2157 = vmatprep.subr.mxu0 %v2314_v0  ;;  %2170 = vmatprep.subr.mxu1 %v2314_v0 }
  0x60   :  { %2158 = vmatpush3.msra.mxu0 %v2680_v30  ;;  %2171 = vmatpush3.msra.mxu1 %v770_v33 }
  0x61   :  { %2159 = vmatprep.subr.mxu0 %v2314_v0  ;;  %2172 = vmatprep.subr.mxu1 %v2314_v0 }
  0x62   :  { %2160 = vmatpush3.msra.mxu0 %v2693_v36  ;;  %2173 = vmatpush3.msra.mxu1 %v777_v39 }
  0x63   :  { %2161 = vmatprep.subr.mxu0 %v2314_v0  ;;  %2174 = vmatprep.subr.mxu1 %v2314_v0 }
  0x64   :  { %2162 = vmatpush3.msra.mxu0 %v2703_v42  ;;  %2175 = vmatpush3.msra.mxu1 %v784_v47 }
  0x65   :  { %2185 = vmatprep.subr.mxu0 %v2314_v0  ;;  %2176 = vmatprep.subr.mxu1 %v2314_v0 }
  0x66   :  { %2177 = vmatpush3.msra.mxu1 %v791_v48 }
  0x67   :  { %2178 = vmatprep.subr.mxu1 %v2314_v0 }
  0x68   :  { %2179 = vmatpush3.msra.mxu1 %v798_v51  ;;  %v1198_v51 = vld [vmem:[%s3136_s5 + $0x30] sm:$0xff] }
  0x69   :  { %2180 = vmatprep.subr.mxu1 %v2314_v0 }
  0x6a   :  { %2181 = vmatpush3.msra.mxu1 %v805_v53 }
  0x6b   :  { %2204 = vmatprep.subr.mxu1 %v2314_v0 }
  0xe7   :  { %v148_v54 = vpop.f32.mrf.mxu0 }
  0xe8   :  { %v149_v63 = vadd.f32 %v1887_v62, %v148_v54 }
  0xe9   :  { %v2031_v55 = vpop.f32.mrf.mxu0 }
  0xee   :  { %v269_v56 = vpop.f32.mrf.mxu1 }
  0xef   :  { %v270_v2 = vadd.f32 %v269_v56, %v149_v63  ;;  %v1197_v56 = vld [vmem:[%s3136_s5 + $0x28] sm:$0xff] }
  0xf0   :  { %v2054_v57 = vpop.f32.mrf.mxu1 }
  0xfb   :  { %v361_v58 = vpop.f32.mrf.mxu0 }
  0xfc   :  { %v362_v4 = vadd.f32 %v361_v58, %v270_v2  ;;  %v2935_v2 = vand.u32 4294901760, %v1198_v51 }
  0xfd   :  { %v2077_v59 = vpop.f32.mrf.mxu0 }
 0x104   :  { %v444_v60 = vpop.f32.mrf.mxu1 }
 0x105   :  { %v445_v7 = vadd.f32 %v444_v60, %v362_v4 }
 0x106   :  { %v2100_v61 = vpop.f32.mrf.mxu1 }
 0x107   :  { %v1196_v61 = vld [vmem:[%s3136_s5 + $0x20] sm:$0xff] }
 0x111   :  { %v545_v1 = vpop.f32.mrf.mxu0 }
 0x112   :  { %v546_v5 = vadd.f32 %v545_v1, %v445_v7 }
 0x113   :  { %v2123_v3 = vpop.f32.mrf.mxu0 }
 0x114   :  { %v1195_v3 = vld [vmem:[%s3136_s5 + $0x18] sm:$0xff] }
 0x11a   :  { %v626_v8 = vpop.f32.mrf.mxu1 }
 0x11b   :  { %v627_v11 = vadd.f32 %v626_v8, %v546_v5  ;;  %v2946_v8 = vand.u32 4294901760, %v1197_v56 }
 0x11c   :  { %v2146_v15 = vpop.f32.mrf.mxu1 }
 0x11d   :  { %vm630_vm3 = vcmp.gt.f32.partialorder %v627_v11, 0.0  ;;  %v631_v16 = vmul.f32 0.2, %v627_v11 }
 0x11f   :  { %v632_v20 = vsel %vm630_vm3, %v627_v11, %v631_v16  ;;  %v1194_v11 = vld [vmem:[%s3136_s5 + $0x10] sm:$0xff] }
 0x120   :  { %v650_v21 = vsel %vm648_vm4, %v632_v20, 0  ;;  %v2956_v20 = vsub.f32 %v1198_v51, %v2935_v2 }
 0x121   :  { %v2737_v22 = vand.u32 4294901760, %v650_v21 }
 0x123   :  { %v726_v26 = vsub.f32 %v650_v21, %v2737_v22  ;;  %2183 = vmatmul.mubr.f32.vlgmr.msra.gmra.mxu1 %v2737_v22  ;;  %v2958_v21 = vand.u32 4294901760, %v1196_v61 }
 0x124   :  { %2205 = vmatpush3.msra.mxu1 %v2637_v6  ;;  %2220 = vmatprep.mubr.msk.f32.mxu1 %vm2315_vm0, %v2314_v0 }
 0x125   :  { %2206 = vmatprep.subr.mxu1 %v2314_v0  ;;  %v727_v27 = vand.u32 4294901760, %v726_v26 }
 0x126   :  { %2207 = vmatpush3.msra.mxu1 %v2642_v10 }
 0x127   :  { %2208 = vmatprep.subr.mxu1 %v2314_v0  ;;  %v728_v28 = vsub.f32 %v726_v26, %v727_v27 }
 0x128   :  { %2209 = vmatpush3.msra.mxu1 %v2650_v14 }
 0x129   :  { %2210 = vmatprep.subr.mxu1 %v2314_v0  ;;  %v729_v32 = vand.u32 4294901760, %v728_v28  ;;  %v2966_v28 = vsub.f32 %v1197_v56, %v2946_v8 }
 0x12a   :  { %2211 = vmatpush3.msra.mxu1 %v2661_v19 }
 0x12b   :  { %2212 = vmatprep.subr.mxu1 %v2314_v0  ;;  %2164 = vmatmul.mubr.f32.vlgmr.msra.gmra.mxu0 %v729_v32  ;;  %v2968_v32 = vand.u32 4294901760, %v1195_v3 }
 0x12c   :  { %2186 = vmatpush3.msra.mxu0 %v2640_v9  ;;  %2213 = vmatpush3.msra.mxu1 %v2673_v25 }
 0x12d   :  { %2187 = vmatprep.subr.mxu0 %v2314_v0  ;;  %2214 = vmatprep.subr.mxu1 %v2314_v0 }
 0x12e   :  { %2188 = vmatpush3.msra.mxu0 %v2648_v13  ;;  %2215 = vmatpush3.msra.mxu1 %v2680_v30  ;;  %v1205_v13 = vld [vmem:[%s3136_s5 + $0x68] sm:$0xff] }
 0x12f   :  { %2189 = vmatprep.subr.mxu0 %v2314_v0  ;;  %2216 = vmatprep.subr.mxu1 %v2314_v0 }
 0x130   :  { %2190 = vmatpush3.msra.mxu0 %v2659_v18  ;;  %2217 = vmatpush3.msra.mxu1 %v2693_v36  ;;  %v1204_v18 = vld [vmem:[%s3136_s5 + $0x60] sm:$0xff] }
 0x131   :  { %2191 = vmatprep.subr.mxu0 %v2314_v0  ;;  %2218 = vmatprep.subr.mxu1 %v2314_v0 }
 0x132   :  { %2192 = vmatpush3.msra.mxu0 %v2670_v24  ;;  %2219 = vmatpush3.msra.mxu1 %v2703_v42  ;;  %v1203_v24 = vld [vmem:[%s3136_s5 + $0x58] sm:$0xff] }
 0x133   :  { %2193 = vmatprep.subr.mxu0 %v2314_v0  ;;  %2221 = vmatmul.mubr.f32.vlgmr.msra.gmra.mxu1 %v727_v27 }
 0x134   :  { %2242 = vmatprep.subr.mxu1 %v2314_v0  ;;  %2194 = vmatpush3.msra.mxu0 %v2684_v31  ;;  %v1202_v31 = vld [vmem:[%s3136_s5 + $0x50] sm:$0xff] }
 0x135   :  { %2243 = vmatpush3.msra.mxu1 %v2637_v6  ;;  %2195 = vmatprep.subr.mxu0 %v2314_v0  ;;  %v1207_v6 = vld [vmem:[%s3136_s5 + $0x78] sm:$0xff] }
 0x136   :  { %2244 = vmatprep.subr.mxu1 %v2314_v0  ;;  %2196 = vmatpush3.msra.mxu0 %v2691_v35  ;;  %v2826_v9 = vand.u32 4294901760, %v1207_v6  ;;  %v2868_v35 = vand.u32 4294901760, %v1202_v31 }
 0x137   :  { %2245 = vmatpush3.msra.mxu1 %v2642_v10  ;;  %2197 = vmatprep.subr.mxu0 %v2314_v0  ;;  %v1206_v10 = vld [vmem:[%s3136_s5 + $0x70] sm:$0xff] }
 0x138   :  { %2246 = vmatprep.subr.mxu1 %v2314_v0  ;;  %2198 = vmatpush3.msra.mxu0 %v2701_v41  ;;  %v1200_v41 = vld [vmem:[%s3136_s5 + $0x40] sm:$0xff]  ;;  %v2892_v44 = vsub.f32 %v1202_v31, %v2868_v35 }
 0x139   :  { %2247 = vmatpush3.msra.mxu1 %v2650_v14  ;;  %2199 = vmatprep.subr.mxu0 %v2314_v0  ;;  %v2837_v14 = vsub.f32 %v1207_v6, %v2826_v9  ;;  %v1192_v6 = vld [vmem:[%s3136_s5] sm:$0xff] }
 0x13a   :  { %2248 = vmatprep.subr.mxu1 %v2314_v0  ;;  %2200 = vmatpush3.msra.mxu0 %v2716_v46  ;;  %v1199_v46 = vld [vmem:[%s3136_s5 + $0x38] sm:$0xff]  ;;  %v1363_v54 = vand.u32 4294901760, %v2892_v44 }
 0x13b   :  { %2201 = vmatprep.mubr.msk.f32.mxu0 %vm2315_vm0, %v2314_v0  ;;  %2249 = vmatpush3.msra.mxu1 %v2661_v19  ;;  %v2926_v60 = vand.u32 4294901760, %v1199_v46 }
 0x13c   :  { %2202 = vmatmul.mubr.f32.vlgmr.msra.gmra.mxu0 %v726_v26  ;;  %2223 = vmatprep.subr.mxu0 %v2314_v0  ;;  %v1364_v63 = vsub.f32 %v2892_v44, %v1363_v54 }
 0x13d   :  { %2250 = vmatprep.subr.mxu1 %v2314_v0  ;;  %2224 = vmatpush3.msra.mxu0 %v754_v12  ;;  %v2831_v12 = vand.u32 4294901760, %v1206_v10  ;;  %v2944_v5 = vsub.f32 %v1199_v46, %v2926_v60 }
 0x13e   :  { %2251 = vmatpush3.msra.mxu1 %v2673_v25  ;;  %2225 = vmatprep.subr.mxu0 %v2314_v0  ;;  %v1333_v25 = vand.u32 4294901760, %v2837_v14  ;;  %v1365_v15 = vand.u32 4294901760, %v1364_v63 }
 0x13f   :  { %2252 = vmatprep.subr.mxu1 %v2314_v0  ;;  %2226 = vmatpush3.msra.mxu0 %v761_v17  ;;  %v2839_v17 = vand.u32 4294901760, %v1205_v13  ;;  %v2846_v19 = vsub.f32 %v1206_v10, %v2831_v12  ;;  %v1381_v27 = vand.u32 4294901760, %v2944_v5 }
 0x140   :  { %2253 = vmatpush3.msra.mxu1 %v2680_v30  ;;  %2227 = vmatprep.subr.mxu0 %v2314_v0  ;;  %v2858_v30 = vand.u32 4294901760, %v1203_v24 }
 0x141   :  { %2254 = vmatprep.subr.mxu1 %v2314_v0  ;;  %2228 = vmatpush3.msra.mxu0 %v768_v23  ;;  %v2848_v23 = vand.u32 4294901760, %v1204_v18  ;;  %v1339_v33 = vand.u32 4294901760, %v2846_v19  ;;  %v1382_v31 = vsub.f32 %v2944_v5, %v1381_v27 }
 0x142   :  { %2255 = vmatpush3.msra.mxu1 %v2693_v36  ;;  %2229 = vmatprep.subr.mxu0 %v2314_v0  ;;  %v1201_v36 = vld [vmem:[%s3136_s5 + $0x48] sm:$0xff]  ;;  %v2879_v39 = vsub.f32 %v1203_v24, %v2858_v30  ;;  %v2978_v24 = vand.u32 4294901760, %v1194_v11 }
 0x143   :  { %2256 = vmatprep.subr.mxu1 %v2314_v0  ;;  %2230 = vmatpush3.msra.mxu0 %v775_v29  ;;  %v2856_v29 = vsub.f32 %v1205_v13, %v2839_v17  ;;  %v2866_v34 = vsub.f32 %v1204_v18, %v2848_v23  ;;  %v1387_v13 = vand.u32 4294901760, %v2956_v20  ;;  %v2976_v18 = vsub.f32 %v1196_v61, %v2958_v21 }
 0x144   :  { %2257 = vmatpush3.msra.mxu1 %v2703_v42  ;;  %2258 = vmatprep.mubr.msk.f32.mxu1 %vm2315_vm0, %v2314_v0  ;;  %v1340_v42 = vsub.f32 %v2846_v19, %v1339_v33  ;;  %v1357_v49 = vand.u32 4294901760, %v2879_v39  ;;  %v1383_v51 = vand.u32 4294901760, %v1382_v31 }
 0x145   :  { %2231 = vmatprep.subr.mxu0 %v2314_v0  ;;  %2259 = vmatmul.mubr.f32.vlgmr.msra.gmra.mxu1 %v2737_v22  ;;  %v1345_v38 = vand.u32 4294901760, %v2856_v29  ;;  %v1351_v43 = vand.u32 4294901760, %v2866_v34  ;;  %v1399_v46 = vand.u32 4294901760, %v2976_v18 }
 0x146   :  { %2232 = vmatpush3.msra.mxu0 %v782_v37  ;;  %2239 = vmatprep.mubr.msk.f32.mxu0 %vm2315_vm0, %v2314_v0  ;;  %v1334_v37 = vsub.f32 %v2837_v14, %v1333_v25  ;;  %v1341_v52 = vand.u32 4294901760, %v1340_v42  ;;  %v1358_v58 = vsub.f32 %v2879_v39, %v1357_v49  ;;  %v1388_v42 = vsub.f32 %v2956_v20, %v1387_v13 }
 0x147   :  { %2233 = vmatprep.subr.mxu0 %v2314_v0  ;;  %1459 = vmatprep.mubr.f32.mxu1 %v2314_v0  ;;  %v1346_v48 = vsub.f32 %v2856_v29, %v1345_v38  ;;  %v1352_v53 = vsub.f32 %v2866_v34, %v1351_v43 }
 0x148   :  { %2234 = vmatpush3.msra.mxu0 %v789_v40  ;;  %v2881_v40 = vand.u32 4294901760, %v1201_v36  ;;  %v1335_v47 = vand.u32 4294901760, %v1334_v37  ;;  %v1359_v4 = vand.u32 4294901760, %v1358_v58  ;;  %v2986_v37 = vsub.f32 %v1195_v3, %v2968_v32 }
 0x149   :  { %2235 = vmatprep.subr.mxu0 %v2314_v0  ;;  %v1347_v57 = vand.u32 4294901760, %v1346_v48  ;;  %v1353_v62 = vand.u32 4294901760, %v1352_v53  ;;  %v2998_v48 = vand.u32 4294901760, %v1192_v6  ;;  %v1400_v58 = vsub.f32 %v2976_v18, %v1399_v46 }
 0x14a   :  { %2236 = vmatpush3.msra.mxu0 %v796_v45  ;;  %v2894_v45 = vand.u32 4294901760, %v1200_v41  ;;  %1336 = vmatprep.subr.mxu1 %v1335_v47  ;;  %v2996_v47 = vsub.f32 %v1194_v11, %v2978_v24  ;;  %v3142_v53 = vand.u32 4294901760, %v2986_v37 }
 0x14b   :  { %2237 = vmatprep.subr.mxu0 %v2314_v0  ;;  %1342 = vmatpush1.msra.mxu1 %v1341_v52 }
 0x14c   :  { %2238 = vmatpush3.msra.mxu0 %v803_v50  ;;  %v2905_v50 = vsub.f32 %v1201_v36, %v2881_v40  ;;  %v2916_v55 = vsub.f32 %v1200_v41, %v2894_v45  ;;  %1348 = vmatprep.subr.mxu1 %v1347_v57  ;;  %v1393_v36 = vand.u32 4294901760, %v2966_v28  ;;  %v1389_v57 = vand.u32 4294901760, %v1388_v42 }
 0x14d   :  { %2240 = vmatmul.mubr.f32.vlgmr.msra.gmra.mxu0 %v2737_v22  ;;  %1240 = vmatprep.subr.mxu0 %v2826_v9  ;;  %v1193_v22 = vld [vmem:[%s3136_s5 + $0x8] sm:$0xff]  ;;  %v3141_v61 = vand.u32 4294901760, %v2996_v47  ;;  %v1406_v3 = vsub.f32 %v2986_v37, %v3142_v53 }
 0x14e   :  { %1303 = vmatprep.mubr.f32.mxu0 %v2314_v0  ;;  %1242 = vmatpush1.msra.mxu0 %v2831_v12  ;;  %v1369_v59 = vand.u32 4294901760, %v2905_v50  ;;  %v1375_v1 = vand.u32 4294901760, %v2916_v55  ;;  %v2988_v41 = vand.u32 4294901760, %v1193_v22  ;;  %v1394_v52 = vsub.f32 %v2966_v28, %v1393_v36 }
 0x14f   :  { %1244 = vmatprep.subr.mxu0 %v2839_v17  ;;  %1354 = vmatpush1.msra.mxu1 %v1353_v62  ;;  %v3014_v62 = vsub.f32 %v1192_v6, %v2998_v48  ;;  %v1412_v11 = vsub.f32 %v2996_v47, %v3141_v61 }
 0x150   :  { %1246 = vmatpush1.msra.mxu0 %v2848_v23  ;;  %v1370_v7 = vsub.f32 %v2905_v50, %v1369_v59  ;;  %v1376_v16 = vsub.f32 %v2916_v55, %v1375_v1  ;;  %1360 = vmatprep.subr.mxu1 %v1359_v4  ;;  %v3006_v56 = vsub.f32 %v1193_v22, %v2988_v41  ;;  %v1395_v63 = vand.u32 4294901760, %v1394_v52 }
 0x151   :  { %1248 = vmatprep.subr.mxu0 %v2858_v30  ;;  %1366 = vmatpush1.msra.mxu1 %v1365_v15  ;;  %v3139_v15 = vand.u32 4294901760, %v3014_v62 }
 0x152   :  { %1250 = vmatpush1.msra.mxu0 %v2868_v35  ;;  %v1371_v26 = vand.u32 4294901760, %v1370_v7  ;;  %v1377_v10 = vand.u32 4294901760, %v1376_v16  ;;  %v3140_v4 = vand.u32 4294901760, %v3006_v56  ;;  %v1401_v7 = vand.u32 4294901760, %v1400_v58 }
 0x153   :  { %1252 = vmatprep.subr.mxu0 %v2881_v40  ;;  %v1407_v16 = vand.u32 4294901760, %v1406_v3  ;;  %v1424_v6 = vsub.f32 %v3014_v62, %v3139_v15 }
 0x154   :  { %1254 = vmatpush1.msra.mxu0 %v2894_v45  ;;  %1372 = vmatprep.subr.mxu1 %v1371_v26  ;;  %v1418_v22 = vsub.f32 %v3006_v56, %v3140_v4  ;;  %v1413_v26 = vand.u32 4294901760, %v1412_v11  ;;  %v1888_v11 = vld [vmem:[%s3135_s4] ss:$0 sm:$0xff] }
 0x155   :  { %1256 = vmatprep.subr.mxu0 %v2926_v60  ;;  %1378 = vmatpush1.msra.mxu1 %v1377_v10  ;;  %v1425_v31 = vand.u32 4294901760, %v1424_v6 }
 0x156   :  { %1258 = vmatpush1.msra.mxu0 %v2935_v2  ;;  %1384 = vmatprep.subr.mxu1 %v1383_v51  ;;  %v1419_v10 = vand.u32 4294901760, %v1418_v22 }
 0x157   :  { %1260 = vmatprep.subr.mxu0 %v2946_v8  ;;  %1390 = vmatpush1.msra.mxu1 %v1389_v57 }
 0x158   :  { %1262 = vmatpush1.msra.mxu0 %v2958_v21  ;;  %1396 = vmatprep.subr.mxu1 %v1395_v63 }
 0x159   :  { %1264 = vmatprep.subr.mxu0 %v2968_v32  ;;  %1402 = vmatpush1.msra.mxu1 %v1401_v7 }
 0x15a   :  { %1266 = vmatpush1.msra.mxu0 %v2978_v24  ;;  %1408 = vmatprep.subr.mxu1 %v1407_v16 }
 0x15b   :  { %1268 = vmatprep.subr.mxu0 %v2988_v41  ;;  %1414 = vmatpush1.msra.mxu1 %v1413_v26 }
 0x15c   :  { %1270 = vmatpush1.msra.mxu0 %v2998_v48  ;;  %1420 = vmatprep.subr.mxu1 %v1419_v10 }
 0x15d   :  { %1485 = vmatprep.subr.mxu0 %v2837_v14  ;;  %1426 = vmatpush1.msra.mxu1 %v1425_v31  ;;  %v3145_v14 = vand.u32 4294901760, %v3006_v56 }
 0x15e   :  { %1589 = vmatprep.subr.mxu1 %v2826_v9 }
 0x1e3   :  { %v842_v42 = vpop.f32.mrf.mxu1 }
 0x1e5   :  { %v2184_v51 = vpop.f32.mrf.mxu1 }
 0x1eb   :  { %v731_v52 = vpop.f32.mrf.mxu0 }
 0x1ec   :  { %v732_v16 = vadd.f32 %v1888_v11, %v731_v52 }
 0x1ed   :  { %v2165_v57 = vpop.f32.mrf.mxu0 }
 0x1ee   :  { %v843_v26 = vadd.f32 %v842_v42, %v732_v16 }
 0x1f3   :  { %v1011_v58 = vpop.f32.mrf.mxu1 }
 0x1f5   :  { %v2222_v63 = vpop.f32.mrf.mxu1 }
 0x1fc   :  { %v930_v3 = vpop.f32.mrf.mxu0 }
 0x1fd   :  { %v931_v10 = vadd.f32 %v930_v3, %v843_v26 }
 0x1fe   :  { %v2203_v7 = vpop.f32.mrf.mxu0 }
 0x1ff   :  { %v1012_v31 = vadd.f32 %v1011_v58, %v931_v10 }
 0x205   :  { %v1185_v22 = vpop.f32.mrf.mxu1 }
 0x207   :  { %v2260_v6 = vpop.f32.mrf.mxu1 }
 0x20d   :  { %v1106_v15 = vpop.f32.mrf.mxu0 }
 0x20e   :  { %v1107_v4 = vadd.f32 %v1106_v15, %v1012_v31 }
 0x20f   :  { %v2241_v61 = vpop.f32.mrf.mxu0 }
 0x210   :  { %v1186_v51 = vadd.f32 %v1185_v22, %v1107_v4 }
 0x212   :  { %vm1189_vm5 = vcmp.gt.f32.partialorder %v1186_v51, 0.0  ;;  %v1190_v57 = vmul.f32 0.2, %v1186_v51 }
 0x214   :  { %v1191_v53 = vsel %vm1189_vm5, %v1186_v51, %v1190_v57 }
 0x215   :  { %v1221_v63 = vsel %vm648_vm4, %v1191_v53, 0 }
 0x216   :  { %v3037_v7 = vand.u32 4294901760, %v1221_v63 }
 0x218   :  { %1461 = vmatmul.mubr.f32.vlgmr.msra.gmra.mxu1 %v3037_v7  ;;  %v1305_v52 = vsub.f32 %v1221_v63, %v3037_v7 }
 0x219   :  { %1591 = vmatpush1.msra.mxu1 %v2831_v12  ;;  %1652 = vmatprep.mubr.f32.mxu1 %v2314_v0 }
 0x21a   :  { %1593 = vmatprep.subr.mxu1 %v2839_v17  ;;  %v1306_v15 = vand.u32 4294901760, %v1305_v52 }
 0x21b   :  { %1595 = vmatpush1.msra.mxu1 %v2848_v23 }
 0x21c   :  { %1597 = vmatprep.subr.mxu1 %v2858_v30  ;;  %v1307_v61 = vsub.f32 %v1305_v52, %v1306_v15 }
 0x21d   :  { %1599 = vmatpush1.msra.mxu1 %v2868_v35 }
 0x21e   :  { %1601 = vmatprep.subr.mxu1 %v2881_v40  ;;  %v1308_v53 = vand.u32 4294901760, %v1307_v61 }
 0x21f   :  { %1603 = vmatpush1.msra.mxu1 %v2894_v45 }
 0x220   :  { %1605 = vmatprep.subr.mxu1 %v2926_v60  ;;  %1309 = vmatmul.mubr.f32.vlgmr.msra.gmra.mxu0 %v1308_v53 }
 0x221   :  { %1488 = vmatpush1.msra.mxu0 %v2846_v19  ;;  %1607 = vmatpush1.msra.mxu1 %v2935_v2 }
 0x222   :  { %1491 = vmatprep.subr.mxu0 %v2856_v29  ;;  %1609 = vmatprep.subr.mxu1 %v2946_v8 }
 0x223   :  { %1494 = vmatpush1.msra.mxu0 %v2866_v34  ;;  %1611 = vmatpush1.msra.mxu1 %v2958_v21 }
 0x224   :  { %1497 = vmatprep.subr.mxu0 %v2879_v39  ;;  %1613 = vmatprep.subr.mxu1 %v2968_v32 }
 0x225   :  { %1500 = vmatpush1.msra.mxu0 %v2892_v44  ;;  %1615 = vmatpush1.msra.mxu1 %v2978_v24 }
 0x226   :  { %1503 = vmatprep.subr.mxu0 %v2905_v50  ;;  %1617 = vmatprep.subr.mxu1 %v2988_v41 }
 0x227   :  { %1506 = vmatpush1.msra.mxu0 %v2916_v55  ;;  %1619 = vmatpush1.msra.mxu1 %v2998_v48 }
 0x228   :  { %1509 = vmatprep.subr.mxu0 %v2944_v5  ;;  %1656 = vmatmul.mubr.f32.vlgmr.msra.gmra.mxu1 %v1306_v15 }
 0x229   :  { %1799 = vmatprep.subr.mxu1 %v2826_v9  ;;  %1512 = vmatpush1.msra.mxu0 %v2956_v20  ;;  %v3143_v9 = vand.u32 4294901760, %v2986_v37 }
 0x22a   :  { %1801 = vmatpush1.msra.mxu1 %v2831_v12  ;;  %1515 = vmatprep.subr.mxu0 %v2966_v28  ;;  %v3144_v12 = vand.u32 4294901760, %v2996_v47 }
 0x22b   :  { %1803 = vmatprep.subr.mxu1 %v2839_v17  ;;  %1518 = vmatpush1.msra.mxu0 %v2976_v18  ;;  %v3146_v17 = vand.u32 4294901760, %v3014_v62 }
 0x22c   :  { %1805 = vmatpush1.msra.mxu1 %v2848_v23  ;;  %1521 = vmatprep.subr.mxu0 %v2986_v37 }
 0x22d   :  { %1807 = vmatprep.subr.mxu1 %v2858_v30  ;;  %1524 = vmatpush1.msra.mxu0 %v2996_v47 }
 0x22e   :  { %1809 = vmatpush1.msra.mxu1 %v2868_v35  ;;  %1527 = vmatprep.subr.mxu0 %v3006_v56 }
 0x22f   :  { %1811 = vmatprep.subr.mxu1 %v2881_v40  ;;  %1530 = vmatpush1.msra.mxu0 %v3014_v62 }
 0x230   :  { %1563 = vmatprep.mubr.f32.mxu0 %v2314_v0  ;;  %1813 = vmatpush1.msra.mxu1 %v2894_v45 }
 0x231   :  { %1566 = vmatmul.mubr.f32.vlgmr.msra.gmra.mxu0 %v1305_v52  ;;  %1681 = vmatprep.subr.mxu0 %v1333_v25  ;;  %v1208_v25 = vld [vmem:[%s3137_s6] sm:$0x3]  ;;  %s2316_s6 = smov [#allocation5]  }
 0x232   :  { %1815 = vmatprep.subr.mxu1 %v2926_v60  ;;  %1685 = vmatpush1.msra.mxu0 %v1339_v33  ;;  %s1878_s11 = sshll.u32 %s2316_s6, 4  ;;  %s1879_s11 = int_to_ptr.vmem [resolvable:$true] %s1878_s11 }
 0x233   :  { %1817 = vmatpush1.msra.mxu1 %v2935_v2  ;;  %1689 = vmatprep.subr.mxu0 %v1345_v38  ;;  %s2287_s12 = scalar_lea.vmem %s1879_s11, 256  ;;  %p2292_p6 = scmp.lt.s32.totalorder %s1879_s11, %s1879_s11 }
 0x234   :  { %1819 = vmatprep.subr.mxu1 %v2946_v8  ;;  %1693 = vmatpush1.msra.mxu0 %v1351_v43  ;;  %p2288_p5 = scmp.ne.s32.totalorder %s1879_s11, %s2287_s12  ;;  %p2293_p7 = scmp.lt.s32.totalorder %s2287_s12, %s2287_s12 }
 0x235   :  { %1821 = vmatpush1.msra.mxu1 %v2958_v21  ;;  %1697 = vmatprep.subr.mxu0 %v1357_v49 }
 0x236   :  { %1823 = vmatprep.subr.mxu1 %v2968_v32  ;;  %1701 = vmatpush1.msra.mxu0 %v1363_v54  ;;  %p2294_p8 = por %p2293_p7, %p2292_p6 }
 0x237   :  { %1825 = vmatpush1.msra.mxu1 %v2978_v24  ;;  %1705 = vmatprep.subr.mxu0 %v1369_v59 }
 0x238   :  { %1827 = vmatprep.subr.mxu1 %v2988_v41  ;;  %1709 = vmatpush1.msra.mxu0 %v1375_v1  ;;  %p2295_p9 = pnand %p2294_p8, %p2288_p5 }
 0x239   :  { %1829 = vmatpush1.msra.mxu1 %v2998_v48  ;;  %1862 = vmatprep.mubr.f32.mxu1 %v2314_v0 }
 0x23a   :  { %1713 = vmatprep.subr.mxu0 %v1381_v27  ;;  %1864 = vmatmul.mubr.f32.vlgmr.msra.gmra.mxu1 %v3037_v7 }
 0x23b   :  { %1717 = vmatpush1.msra.mxu0 %v1387_v13  ;;  %1774 = vmatprep.mubr.f32.mxu0 %v2314_v0  ;;  %v1210_v0 = vlaneseq }
 0x23c   :  { %1721 = vmatprep.subr.mxu0 %v1393_v36 }
 0x23d   :  { %1725 = vmatpush1.msra.mxu0 %v1399_v46  ;;  %v1211_v19 = vshrl.u32 %v1210_v0, 7 }
 0x23e   :  { %1729 = vmatprep.subr.mxu0 %v3143_v9 }
 0x23f   :  { %1733 = vmatpush1.msra.mxu0 %v3144_v12  ;;  %v1212_v23 = vsub.s32 0, %v1211_v19  ;;  %v1216_v29 = vsub.s32 1, %v1211_v19 }
 0x240   :  { %1737 = vmatprep.subr.mxu0 %v3145_v14 }
 0x241   :  { %1741 = vmatpush1.msra.mxu0 %v3146_v17  ;;  %v1213_v33 = vrot.slane %v1208_v25, %v1212_v23  ;;  %v1217_v34 = vrot.slane %v1208_v25, %v1216_v29 }
 0x242   :  { %1776 = vmatmul.mubr.f32.vlgmr.msra.gmra.mxu0 %v3037_v7 }
 0x2d8   :  { %v1462_v35 = vpop.f32.mrf.mxu1 }
 0x2da   :  { %v1464_v44 = vpop.f32.mrf.mxu1 }
 0x2e0   :  { %v1310_v30 = vpop.f32.mrf.mxu0 }
 0x2e1   :  { %v1311_v39 = vadd.f32 %v1310_v30, %v1213_v33 }
 0x2e2   :  { %v1312_v38 = vpop.f32.mrf.mxu0 }
 0x2e3   :  { %v1313_v43 = vadd.f32 %v1312_v38, %v1217_v34  ;;  %v1463_v45 = vadd.f32 %v1462_v35, %v1311_v39 }
 0x2e5   :  { %v1465_v55 = vadd.f32 %v1464_v44, %v1313_v43 }
 0x2e8   :  { %v1657_v49 = vpop.f32.mrf.mxu1 }
 0x2ea   :  { %v1659_v60 = vpop.f32.mrf.mxu1 }
 0x2f1   :  { %v1567_v40 = vpop.f32.mrf.mxu0 }
 0x2f2   :  { %v1568_v54 = vadd.f32 %v1567_v40, %v1463_v45 }
 0x2f3   :  { %v1569_v50 = vpop.f32.mrf.mxu0 }
 0x2f4   :  { %v1570_v59 = vadd.f32 %v1569_v50, %v1465_v55  ;;  %v1658_v1 = vadd.f32 %v1657_v49, %v1568_v54 }
 0x2f6   :  { %v1660_v20 = vadd.f32 %v1659_v60, %v1570_v59 }
 0x2fa   :  { %v1865_v2 = vpop.f32.mrf.mxu1 }
 0x2fc   :  { %v1867_v32 = vpop.f32.mrf.mxu1 }
 0x302   :  { %v1777_v5 = vpop.f32.mrf.mxu0 }
 0x303   :  { %v1778_v8 = vadd.f32 %v1777_v5, %v1658_v1 }
 0x304   :  { %v1779_v21 = vpop.f32.mrf.mxu0 }
 0x305   :  { %v1866_v27 = vadd.f32 %v1865_v2, %v1778_v8  ;;  %v1780_v28 = vadd.f32 %v1779_v21, %v1660_v20 }
 0x307   :  { %1870 = vst [vmem:[#allocation5] sm:$0xff] %v1866_v27  ;;  %v1868_v13 = vadd.f32 %v1867_v32, %v1780_v28 }
 0x309   :  { %1871 = vst [vmem:[#allocation5 + $0x8] sm:$0xff] %v1868_v13 }
 0x30a   :  { %2298 = shalt.err (!%p2295_p9)
}
 0x30b   :  { %1881 = dma.vmem_to_hbm [thread:$0]  %s1879_s11, 256, %s3138_s7, [#allocation4]  }
 0x30c   :  { %2309 = dma.done.wait [#allocation4], 256  }
 0x30d   :  { %2310 = vsyncadd [#allocation4], 4294967040 }
 0x30e   :  { %1885 = vsyncpa [#allocation3], 1 }
 0x30f   :  { %1886 = vsyncpa [#allocation4], 1 }

</bundles_post_ra>
